<compile_context>
chip_gen: v5e
topology: v5e:2x2
jax: 0.10.0
libtpu: 0.0.40
codegen_flags: <defaults>
</compile_context>

<pallas_src>
import functools
import math

import numpy as np
import jax
import jax.numpy as jnp
from jax.experimental import pallas as pl
from jax.experimental.pallas import tpu as pltpu


# ----------------------------------------------------------------------------
# Exact GELU (erf-based), safe to lower in Mosaic (only exp / mul / add / where)
# ----------------------------------------------------------------------------

_SQRT1_2 = 0.7071067811865476


def _erf_f32(x):
    """Abramowitz & Stegun 7.1.26 erf approximation, |abs err| <= 1.5e-7."""
    a1, a2, a3, a4, a5 = (0.254829592, -0.284496736, 1.421413741,
                          -1.453152027, 1.061405429)
    p = 0.3275911
    z = jnp.abs(x)
    t = 1.0 / (1.0 + p * z)
    poly = ((((a5 * t + a4) * t + a3) * t + a2) * t + a1) * t
    y = 1.0 - poly * jnp.exp(-z * z)
    return jnp.where(x < 0.0, -y, y)


def _gelu_exact_f32(x):
    return 0.5 * x * (1.0 + _erf_f32(x * _SQRT1_2))


# ----------------------------------------------------------------------------
# Fused GeGLU kernel: LayerNorm -> (a, gate) matmuls -> bias -> a * gelu(gate)
# ----------------------------------------------------------------------------

def _geglu_kernel(x_ref, wa_ref, wg_ref, ba_ref, bg_ref, lng_ref, lnb_ref,
                  o_ref, *, eps):
    # ---- LayerNorm prologue (f32) ------------------------------------------
    x = x_ref[...].astype(jnp.float32)                     # (tm, K)
    mu = jnp.mean(x, axis=-1, keepdims=True)
    xc = x - mu
    var = jnp.mean(xc * xc, axis=-1, keepdims=True)
    xn = xc * jax.lax.rsqrt(var + eps)
    xn = xn * lng_ref[...].astype(jnp.float32) + lnb_ref[...].astype(jnp.float32)

    # ---- paired projections on the MXU (f32 accumulation) -------------------
    xn = xn.astype(wa_ref.dtype)                           # f32 or bf16 fast path
    a = jnp.dot(xn, wa_ref[...], preferred_element_type=jnp.float32)
    g = jnp.dot(xn, wg_ref[...], preferred_element_type=jnp.float32)
    a = a + ba_ref[...].astype(jnp.float32)
    g = g + bg_ref[...].astype(jnp.float32)

    # ---- GeGLU epilogue ------------------------------------------------------
    o_ref[...] = (a * _gelu_exact_f32(g)).astype(o_ref.dtype)


@functools.lru_cache(maxsize=None)
def _geglu_call(Mp, K, Np, tm, tn, out_dtype_name, eps):
    out_dtype = jnp.dtype(out_dtype_name)
    kern = functools.partial(_geglu_kernel, eps=eps)
    grid = (Mp // tm, Np // tn)
    return pl.pallas_call(
        kern,
        out_shape=jax.ShapeDtypeStruct((Mp, Np), out_dtype),
        grid_spec=pltpu.PrefetchScalarGridSpec(
            num_scalar_prefetch=0,
            grid=grid,
            in_specs=[
                pl.BlockSpec((tm, K), lambda i, j: (i, 0)),   # x rows (full K)
                pl.BlockSpec((K, tn), lambda i, j: (0, j)),   # W  "a"-half cols
                pl.BlockSpec((K, tn), lambda i, j: (0, j)),   # W gate-half cols
                pl.BlockSpec((1, tn), lambda i, j: (0, j)),   # bias "a"-half
                pl.BlockSpec((1, tn), lambda i, j: (0, j)),   # bias gate-half
                pl.BlockSpec((1, K), lambda i, j: (0, 0)),    # LN gamma
                pl.BlockSpec((1, K), lambda i, j: (0, 0)),    # LN beta
            ],
            out_specs=pl.BlockSpec((tm, tn), lambda i, j: (i, j)),
        ),
        compiler_params=pltpu.CompilerParams(
            dimension_semantics=("parallel", "parallel")),
    )


def _round_up(v, m):
    return (v + m - 1) // m * m


def geglu(x, params, *, eps=1e-5, compute_dtype=None, block_m=256, block_n=512):
    """GeGLU forward.  x: (..., in_dim) -> (..., out_dim).

    params: {'ln_g','ln_b': (in_dim,), 'w': (in_dim, 2*out_dim), 'b': (2*out_dim,)}
    (w is the transposed torch Linear.weight, identical math.)
    compute_dtype: None -> matmul in x.dtype; jnp.bfloat16 -> bf16 MXU inputs,
    f32 accumulation (perf fast path).
    """
    w, b = params["w"], params["b"]
    ln_g, ln_b = params["ln_g"], params["ln_b"]
    *lead, K = x.shape
    two_d = w.shape[1]
    d = two_d // 2
    M = int(np.prod(lead)) if lead else 1
    x2 = x.reshape(M, K)

    # Split the projection into the "a" half and the "gate" half (chunk(2, dim=-1)).
    wa, wg = w[:, :d], w[:, d:]
    ba, bg = b[:d], b[d:]
    if compute_dtype is not None:
        wa = wa.astype(compute_dtype)
        wg = wg.astype(compute_dtype)

    # ---- tile selection: sublane/lane aligned, VMEM-safe on v7x (32 MiB scoped)
    tm = min(block_m, _round_up(M, 8))
    Mp = _round_up(M, tm)
    tn = min(block_n, _round_up(d, 128))
    Np = _round_up(d, tn)

    if Mp != M:
        x2 = jnp.pad(x2, ((0, Mp - M), (0, 0)))
    if Np != d:
        wa = jnp.pad(wa, ((0, 0), (0, Np - d)))
        wg = jnp.pad(wg, ((0, 0), (0, Np - d)))
        ba = jnp.pad(ba, (0, Np - d))
        bg = jnp.pad(bg, (0, Np - d))

    out = _geglu_call(Mp, K, Np, tm, tn, jnp.dtype(x.dtype).name, float(eps))(
        x2, wa, wg,
        ba.reshape(1, Np).astype(jnp.float32),
        bg.reshape(1, Np).astype(jnp.float32),
        ln_g.reshape(1, K).astype(jnp.float32),
        ln_b.reshape(1, K).astype(jnp.float32),
    )
    return out[:M, :d].reshape(*lead, d)


# ----------------------------------------------------------------------------
# Parameters + pure-JAX reference
# ----------------------------------------------------------------------------

def init_geglu_params(key, in_dim, out_dim):
    kw, kb = jax.random.split(key)
    bound = 1.0 / math.sqrt(in_dim)
    return {
        "ln_g": jnp.ones((in_dim,), jnp.float32),
        "ln_b": jnp.zeros((in_dim,), jnp.float32),
        "w": jax.random.uniform(kw, (in_dim, 2 * out_dim), jnp.float32, -bound, bound),
        "b": jax.random.uniform(kb, (2 * out_dim,), jnp.float32, -bound, bound),
    }


def geglu_ref(x, params, eps=1e-5):
    mu = jnp.mean(x, axis=-1, keepdims=True)
    var = jnp.mean((x - mu) ** 2, axis=-1, keepdims=True)
    xn = (x - mu) * jax.lax.rsqrt(var + eps) * params["ln_g"] + params["ln_b"]
    y = xn @ params["w"] + params["b"]
    a, gate = jnp.split(y, 2, axis=-1)
    return a * jax.nn.gelu(gate, approximate=False)


# ----------------------------------------------------------------------------

if __name__ == "__main__":
    key = jax.random.PRNGKey(0)
    B, L, in_dim, out_dim = 2, 8, 32, 64
    kx, kp = jax.random.split(key)
    x = jax.random.normal(kx, (B, L, in_dim), jnp.float32)
    params = init_geglu_params(kp, in_dim, out_dim)

    fwd = jax.jit(lambda xx, pp: geglu(xx, pp))
    out = jax.block_until_ready(fwd(x, params))
    assert out.shape == (B, L, out_dim), out.shape
    assert bool(jnp.all(jnp.isfinite(out)))

    ref = geglu_ref(x, params)
    scale = float(jnp.max(jnp.abs(ref))) + 1e-6
    rel = float(jnp.max(jnp.abs(out - ref))) / scale
    assert rel < 2e-2, f"mismatch vs reference: rel={rel}"

    # bf16-MXU fast path (f32 accumulation), as recommended by the perf review.
    out_bf16 = jax.block_until_ready(geglu(x, params, compute_dtype=jnp.bfloat16))
    assert bool(jnp.all(jnp.isfinite(out_bf16)))
    rel_bf16 = float(jnp.max(jnp.abs(out_bf16 - ref))) / scale
    assert rel_bf16 < 5e-2, f"bf16 path mismatch vs reference: rel={rel_bf16}"

    print("KERNEL_OK")
</pallas_src>

<mosaic_0001>
module attributes {stable_mosaic.version = 11 : i64} {
  func.func @_geglu_kernel(%arg0: i32, %arg1: i32, %arg2: memref<16x32xf32, #tpu.memory_space<vmem>>, %arg3: memref<32x128xf32, #tpu.memory_space<vmem>>, %arg4: memref<32x128xf32, #tpu.memory_space<vmem>>, %arg5: memref<1x128xf32, #tpu.memory_space<vmem>>, %arg6: memref<1x128xf32, #tpu.memory_space<vmem>>, %arg7: memref<1x32xf32, #tpu.memory_space<vmem>>, %arg8: memref<1x32xf32, #tpu.memory_space<vmem>>, %arg9: memref<16x128xf32, #tpu.memory_space<vmem>>) attributes {dimension_semantics = [#tpu.dimension_semantics<parallel>, #tpu.dimension_semantics<parallel>], iteration_bounds = array<i64: 1, 1>, scalar_prefetch = 0 : i64, scratch_operands = 0 : i64, tpu.core_type = #tpu.core_type<tc>, window_params = [{transform_indices = @transform_0, window_bounds = array<i64: 16, 32>}, {transform_indices = @transform_1, window_bounds = array<i64: 32, 128>}, {transform_indices = @transform_2, window_bounds = array<i64: 32, 128>}, {transform_indices = @transform_3, window_bounds = array<i64: 1, 128>}, {transform_indices = @transform_4, window_bounds = array<i64: 1, 128>}, {pipeline_mode = #tpu.pipeline_mode<synchronous>, transform_indices = @transform_5, window_bounds = array<i64: 1, 32>}, {pipeline_mode = #tpu.pipeline_mode<synchronous>, transform_indices = @transform_6, window_bounds = array<i64: 1, 32>}, {transform_indices = @transform_7, window_bounds = array<i64: 16, 128>}]} {
    %c0 = arith.constant 0 : index
    %c0_0 = arith.constant 0 : index
    %0 = vector.load %arg2[%c0, %c0_0] : memref<16x32xf32, #tpu.memory_space<vmem>>, vector<16x32xf32>
    %cst = arith.constant dense<0.000000e+00> : vector<16xf32>
    %1 = vector.multi_reduction <add>, %0, %cst [1] : vector<16x32xf32> to vector<16xf32>
    %2 = vector.shape_cast %1 : vector<16xf32> to vector<16x1xf32>
    %cst_1 = arith.constant 3.200000e+01 : f32
    %3 = vector.broadcast %cst_1 : f32 to vector<16x1xf32>
    %4 = arith.divf %2, %3 : vector<16x1xf32>
    %5 = vector.broadcast %4 : vector<16x1xf32> to vector<16x32xf32>
    %6 = arith.subf %0, %5 : vector<16x32xf32>
    %7 = arith.mulf %6, %6 : vector<16x32xf32>
    %cst_2 = arith.constant dense<0.000000e+00> : vector<16xf32>
    %8 = vector.multi_reduction <add>, %7, %cst_2 [1] : vector<16x32xf32> to vector<16xf32>
    %9 = vector.shape_cast %8 : vector<16xf32> to vector<16x1xf32>
    %cst_3 = arith.constant 3.200000e+01 : f32
    %10 = vector.broadcast %cst_3 : f32 to vector<16x1xf32>
    %11 = arith.divf %9, %10 : vector<16x1xf32>
    %cst_4 = arith.constant 9.99999974E-6 : f32
    %12 = vector.broadcast %cst_4 : f32 to vector<16x1xf32>
    %13 = arith.addf %11, %12 : vector<16x1xf32>
    %14 = math.rsqrt %13 : vector<16x1xf32>
    %15 = vector.broadcast %14 : vector<16x1xf32> to vector<16x32xf32>
    %16 = arith.mulf %6, %15 : vector<16x32xf32>
    %c0_5 = arith.constant 0 : index
    %c0_6 = arith.constant 0 : index
    %17 = vector.load %arg7[%c0_5, %c0_6] : memref<1x32xf32, #tpu.memory_space<vmem>>, vector<1x32xf32>
    %18 = vector.broadcast %17 : vector<1x32xf32> to vector<16x32xf32>
    %19 = arith.mulf %16, %18 : vector<16x32xf32>
    %c0_7 = arith.constant 0 : index
    %c0_8 = arith.constant 0 : index
    %20 = vector.load %arg8[%c0_7, %c0_8] : memref<1x32xf32, #tpu.memory_space<vmem>>, vector<1x32xf32>
    %21 = vector.broadcast %20 : vector<1x32xf32> to vector<16x32xf32>
    %22 = arith.addf %19, %21 : vector<16x32xf32>
    %c0_9 = arith.constant 0 : index
    %c0_10 = arith.constant 0 : index
    %23 = vector.load %arg3[%c0_9, %c0_10] : memref<32x128xf32, #tpu.memory_space<vmem>>, vector<32x128xf32>
    %cst_11 = arith.constant dense<0.000000e+00> : vector<16x128xf32>
    %24 = tpu.matmul %22, %23, %cst_11 {dimension_numbers = #tpu.dot_dimension_numbers<[1], [0], [0], [1], [0, 0, 1, 1], [], []>} : vector<16x32xf32>, vector<32x128xf32>, vector<16x128xf32> -> vector<16x128xf32>
    %c0_12 = arith.constant 0 : index
    %c0_13 = arith.constant 0 : index
    %25 = vector.load %arg4[%c0_12, %c0_13] : memref<32x128xf32, #tpu.memory_space<vmem>>, vector<32x128xf32>
    %cst_14 = arith.constant dense<0.000000e+00> : vector<16x128xf32>
    %26 = tpu.matmul %22, %25, %cst_14 {dimension_numbers = #tpu.dot_dimension_numbers<[1], [0], [0], [1], [0, 0, 1, 1], [], []>} : vector<16x32xf32>, vector<32x128xf32>, vector<16x128xf32> -> vector<16x128xf32>
    %c0_15 = arith.constant 0 : index
    %c0_16 = arith.constant 0 : index
    %27 = vector.load %arg5[%c0_15, %c0_16] : memref<1x128xf32, #tpu.memory_space<vmem>>, vector<1x128xf32>
    %28 = vector.broadcast %27 : vector<1x128xf32> to vector<16x128xf32>
    %29 = arith.addf %24, %28 : vector<16x128xf32>
    %c0_17 = arith.constant 0 : index
    %c0_18 = arith.constant 0 : index
    %30 = vector.load %arg6[%c0_17, %c0_18] : memref<1x128xf32, #tpu.memory_space<vmem>>, vector<1x128xf32>
    %31 = vector.broadcast %30 : vector<1x128xf32> to vector<16x128xf32>
    %32 = arith.addf %26, %31 : vector<16x128xf32>
    %cst_19 = arith.constant 5.000000e-01 : f32
    %33 = vector.broadcast %cst_19 : f32 to vector<16x128xf32>
    %34 = arith.mulf %33, %32 : vector<16x128xf32>
    %cst_20 = arith.constant 0.707106769 : f32
    %35 = vector.broadcast %cst_20 : f32 to vector<16x128xf32>
    %36 = arith.mulf %32, %35 : vector<16x128xf32>
    %37 = math.absf %36 : vector<16x128xf32>
    %cst_21 = arith.constant 0.327591091 : f32
    %38 = vector.broadcast %cst_21 : f32 to vector<16x128xf32>
    %39 = arith.mulf %38, %37 : vector<16x128xf32>
    %cst_22 = arith.constant 1.000000e+00 : f32
    %40 = vector.broadcast %cst_22 : f32 to vector<16x128xf32>
    %41 = arith.addf %40, %39 : vector<16x128xf32>
    %cst_23 = arith.constant 1.000000e+00 : f32
    %42 = vector.broadcast %cst_23 : f32 to vector<16x128xf32>
    %43 = arith.divf %42, %41 : vector<16x128xf32>
    %cst_24 = arith.constant 1.06140542 : f32
    %44 = vector.broadcast %cst_24 : f32 to vector<16x128xf32>
    %45 = arith.mulf %44, %43 : vector<16x128xf32>
    %cst_25 = arith.constant -1.45315206 : f32
    %46 = vector.broadcast %cst_25 : f32 to vector<16x128xf32>
    %47 = arith.addf %45, %46 : vector<16x128xf32>
    %48 = arith.mulf %47, %43 : vector<16x128xf32>
    %cst_26 = arith.constant 1.42141378 : f32
    %49 = vector.broadcast %cst_26 : f32 to vector<16x128xf32>
    %50 = arith.addf %48, %49 : vector<16x128xf32>
    %51 = arith.mulf %50, %43 : vector<16x128xf32>
    %cst_27 = arith.constant -0.284496725 : f32
    %52 = vector.broadcast %cst_27 : f32 to vector<16x128xf32>
    %53 = arith.addf %51, %52 : vector<16x128xf32>
    %54 = arith.mulf %53, %43 : vector<16x128xf32>
    %cst_28 = arith.constant 0.254829586 : f32
    %55 = vector.broadcast %cst_28 : f32 to vector<16x128xf32>
    %56 = arith.addf %54, %55 : vector<16x128xf32>
    %57 = arith.mulf %56, %43 : vector<16x128xf32>
    %cst_29 = arith.constant 0.000000e+00 : f32
    %58 = vector.broadcast %cst_29 : f32 to vector<16x128xf32>
    %59 = arith.subf %58, %37 : vector<16x128xf32>
    %60 = arith.mulf %59, %37 : vector<16x128xf32>
    %61 = math.exp %60 : vector<16x128xf32>
    %62 = arith.mulf %57, %61 : vector<16x128xf32>
    %cst_30 = arith.constant 1.000000e+00 : f32
    %63 = vector.broadcast %cst_30 : f32 to vector<16x128xf32>
    %64 = arith.subf %63, %62 : vector<16x128xf32>
    %cst_31 = arith.constant 0.000000e+00 : f32
    %65 = vector.broadcast %cst_31 : f32 to vector<16x128xf32>
    %66 = arith.cmpf olt, %36, %65 : vector<16x128xf32>
    %cst_32 = arith.constant 0.000000e+00 : f32
    %67 = vector.broadcast %cst_32 : f32 to vector<16x128xf32>
    %68 = arith.subf %67, %64 : vector<16x128xf32>
    %69 = arith.select %66, %68, %64 : vector<16x128xi1>, vector<16x128xf32>
    %cst_33 = arith.constant 1.000000e+00 : f32
    %70 = vector.broadcast %cst_33 : f32 to vector<16x128xf32>
    %71 = arith.addf %70, %69 : vector<16x128xf32>
    %72 = arith.mulf %34, %71 : vector<16x128xf32>
    %73 = arith.mulf %29, %72 : vector<16x128xf32>
    %c0_34 = arith.constant 0 : index
    %c0_35 = arith.constant 0 : index
    %74 = vector.load %arg9[%c0_34, %c0_35] : memref<16x128xf32, #tpu.memory_space<vmem>>, vector<16x128xf32>
    tpu.vector_store %arg9[%c0_34, %c0_35], %73 {strides = array<i32>} : memref<16x128xf32, #tpu.memory_space<vmem>>, vector<16x128xf32>,
    return
  }
  func.func @transform_0(%arg0: i32, %arg1: i32) -> (i32, i32) {
    %c0_i32 = arith.constant 0 : i32
    %c0_i32_0 = arith.constant 0 : i32
    return %arg0, %c0_i32 : i32, i32
  }
  func.func @transform_1(%arg0: i32, %arg1: i32) -> (i32, i32) {
    %c0_i32 = arith.constant 0 : i32
    %c0_i32_0 = arith.constant 0 : i32
    return %c0_i32, %arg1 : i32, i32
  }
  func.func @transform_2(%arg0: i32, %arg1: i32) -> (i32, i32) {
    %c0_i32 = arith.constant 0 : i32
    %c0_i32_0 = arith.constant 0 : i32
    return %c0_i32, %arg1 : i32, i32
  }
  func.func @transform_3(%arg0: i32, %arg1: i32) -> (i32, i32) {
    %c0_i32 = arith.constant 0 : i32
    %c0_i32_0 = arith.constant 0 : i32
    return %c0_i32, %arg1 : i32, i32
  }
  func.func @transform_4(%arg0: i32, %arg1: i32) -> (i32, i32) {
    %c0_i32 = arith.constant 0 : i32
    %c0_i32_0 = arith.constant 0 : i32
    return %c0_i32, %arg1 : i32, i32
  }
  func.func @transform_5(%arg0: i32, %arg1: i32) -> (i32, i32) {
    %c0_i32 = arith.constant 0 : i32
    %c0_i32_0 = arith.constant 0 : i32
    %c0_i32_1 = arith.constant 0 : i32
    return %c0_i32, %c0_i32_0 : i32, i32
  }
  func.func @transform_6(%arg0: i32, %arg1: i32) -> (i32, i32) {
    %c0_i32 = arith.constant 0 : i32
    %c0_i32_0 = arith.constant 0 : i32
    %c0_i32_1 = arith.constant 0 : i32
    return %c0_i32, %c0_i32_0 : i32, i32
  }
  func.func @transform_7(%arg0: i32, %arg1: i32) -> (i32, i32) {
    %c0_i32 = arith.constant 0 : i32
    return %arg0, %arg1 : i32, i32
  }
}

</mosaic_0001>

<bundles_post_ra>
// kernel: _lambda_.1
= control target key start
LH: loop header
LB: loop body
LE: loop exit
PB: predicated region body
PF: predicated region fallthrough
CT: control target
= control target key end

     0   :  { %vm28_vm0 = vcmask 261120   ;;  %v279_v4 = vmov 32.0   ;;  %s397_s0 = inlined_call_operand.vmem [shape: f32[16,32], index: 0, kind: input, shape index: {}]   ;;  %s398_s5 = inlined_call_operand.vmem [shape: f32[1,32], index: 5, kind: input, shape index: {}]   ;;  %s399_s6 = inlined_call_operand.vmem [shape: f32[1,32], index: 6, kind: input, shape index: {}]   ;;  %s400_s3 = inlined_call_operand.vmem [shape: f32[1,128], index: 3, kind: input, shape index: {}]   ;;  %s401_s1 = inlined_call_operand.vmem [shape: f32[32,128], index: 1, kind: input, shape index: {}]   ;;  %s402_s2 = inlined_call_operand.vmem [shape: f32[32,128], index: 2, kind: input, shape index: {}]   ;;  %s403_s4 = inlined_call_operand.vmem [shape: f32[1,128], index: 4, kind: input, shape index: {}]   ;;  %s404_s7 = inlined_call_operand.vmem [shape: f32[16,128], index: 7, kind: output, shape index: {}]  }
   0x1   :  { %v27_v0 = vld [vmem:[%s397_s0 + $0x8] sm:$0xff]  ;;  %v26_v2 = vld [vmem:[%s397_s0] sm:$0xff]  ;;  %265 = vrcp.f32 %v279_v4  ;;  %v95_v21 = vld [vmem:[%s401_s1 + $0x18] sm:$0xff] }
   0x2   :  { %v32_v1 = vsel %vm28_vm0, %v27_v0, 0.0  ;;  %v29_v3 = vsel %vm28_vm0, %v26_v2, 0.0  ;;  %v99_v22 = vld [vmem:[%s402_s2 + $0x18] sm:$0xff]  ;;  %252 = vmatpush.msra.mxu2 %v95_v21  ;;  %v94_v23 = vld [vmem:[%s401_s1 + $0x10] sm:$0xff]  ;;  %122 = vmatpush.msra.mxu0 %v95_v21  ;;  %v93_v25 = vld [vmem:[%s401_s1 + $0x8] sm:$0xff] }
   0x3   :  { %33 = vadd.xlane.f32.xlu0 %v32_v1  ;;  %256 = vmatpush.msra.mxu3 %v99_v22  ;;  %v98_v24 = vld [vmem:[%s402_s2 + $0x10] sm:$0xff]  ;;  %v97_v26 = vld [vmem:[%s402_s2 + $0x8] sm:$0xff]  ;;  %v92_v27 = vld [vmem:[%s401_s1] sm:$0xff] }
   0x4   :  { %149 = vmatpush.msra.mxu1 %v99_v22  ;;  %253 = vmatpush.msra.mxu2 %v94_v23  ;;  %v96_v28 = vld [vmem:[%s402_s2] sm:$0xff] }
   0x5   :  { %257 = vmatpush.msra.mxu3 %v98_v24  ;;  %123 = vmatpush.msra.mxu0 %v94_v23  ;;  %v261_v43 = vld [vmem:[%s398_s5] ss:$0 sm:$0xff] }
   0x6   :  { %150 = vmatpush.msra.mxu1 %v98_v24  ;;  %254 = vmatpush.msra.mxu2 %v93_v25  ;;  %v262_v47 = vld [vmem:[%s399_s6] ss:$0 sm:$0xff] }
   0x7   :  { %v266_v5 = vpop.eup %265  ;;  %258 = vmatpush.msra.mxu3 %v97_v26  ;;  %124 = vmatpush.msra.mxu0 %v93_v25  ;;  %v264_v57 = vld [vmem:[%s403_s4] ss:$0 sm:$0xff] }
   0x8   :  { %v36_v6 = vmul.f32 32.0, %v266_v5  ;;  %vm40_vm1 = vweird.f32 %v266_v5  ;;  %151 = vmatpush.msra.mxu1 %v97_v26  ;;  %255 = vmatpush.msra.mxu2 %v92_v27 }
   0x9   :  { %259 = vmatpush.msra.mxu3 %v96_v28  ;;  %125 = vmatpush.msra.mxu0 %v92_v27 }
   0xa   :  { %v37_v7 = vsub.f32 1.0, %v36_v6  ;;  %152 = vmatpush.msra.mxu1 %v96_v28 }
   0xb   :  { %30 = vadd.xlane.f32.xlu0 %v29_v3 }
   0xc   :  { %v38_v8 = vmul.f32 %v266_v5, %v37_v7 }
   0xe   :  { %v39_v9 = vadd.f32 %v266_v5, %v38_v8 }
  0x10   :  { %v41_v10 = vsel %vm40_vm1, %v266_v5, %v39_v9 }
  0x76   :  { %v34_v11 = vpop.xlane.xlu0 %33 }
  0x77   :  { %v43_v12 = vmul.f32 %v41_v10, %v34_v11 }
  0x79   :  { %v45_v13 = vsub.f32 %v27_v0, %v43_v12 }
  0x7b   :  { %v47_v14 = vmul.f32 %v45_v13, %v45_v13 }
  0x7d   :  { %v51_v15 = vsel %vm28_vm0, %v47_v14, 0.0 }
  0x7e   :  { %52 = vadd.xlane.f32.xlu1 %v51_v15  ;;  %v31_v16 = vpop.xlane.xlu0 %30 }
  0x7f   :  { %v42_v17 = vmul.f32 %v41_v10, %v31_v16 }
  0x81   :  { %v329_v18 = vsub.f32 %v26_v2, %v42_v17 }
  0x83   :  { %v46_v19 = vmul.f32 %v329_v18, %v329_v18 }
  0x85   :  { %v48_v20 = vsel %vm28_vm0, %v46_v19, 0.0 }
  0x86   :  { %49 = vadd.xlane.f32.xlu1 %v48_v20 }
  0xf1   :  { %v53_v29 = vpop.xlane.xlu1 %52 }
  0xf2   :  { %v55_v30 = vmul.f32 %v53_v29, %v41_v10 }
  0xf4   :  { %v57_v31 = vadd.f32 1e-05, %v55_v30 }
  0xf6   :  { %267 = vrsqrt.f32 %v57_v31  ;;  %vm74_vm3 = vweird.f32 %v57_v31 }
  0xf9   :  { %v50_v32 = vpop.xlane.xlu1 %49 }
  0xfa   :  { %v54_v33 = vmul.f32 %v50_v32, %v41_v10 }
  0xfc   :  { %v268_v34 = vpop.eup %267  ;;  %v56_v35 = vadd.f32 1e-05, %v54_v33 }
  0xfd   :  { %v69_v36 = vmul.f32 %v268_v34, %v57_v31  ;;  %vm75_vm2 = vweird.f32 %v268_v34 }
  0xfe   :  { %269 = vrsqrt.f32 %v56_v35  ;;  %vm76_vm4 = vmor %vm74_vm3, %vm75_vm2  ;;  %vm64_vm6 = vweird.f32 %v56_v35 }
  0xff   :  { %v70_v37 = vmul.f32 %v268_v34, %v69_v36 }
 0x101   :  { %v71_v38 = vmul.f32 0.5, %v70_v37 }
 0x103   :  { %v72_v39 = vsub.f32 1.5, %v71_v38 }
 0x104   :  { %v270_v40 = vpop.eup %269 }
 0x105   :  { %v73_v41 = vmul.f32 %v268_v34, %v72_v39  ;;  %v59_v42 = vmul.f32 %v270_v40, %v56_v35  ;;  %vm65_vm5 = vweird.f32 %v270_v40 }
 0x106   :  { %vm66_vm7 = vmor %vm64_vm6, %vm65_vm5 }
 0x107   :  { %v77_v44 = vsel %vm76_vm4, %v268_v34, %v73_v41  ;;  %v60_v45 = vmul.f32 %v270_v40, %v59_v42 }
 0x108   :  { %v79_v46 = vmul.f32 %v77_v44, %v45_v13 }
 0x109   :  { %v61_v48 = vmul.f32 0.5, %v60_v45 }
 0x10a   :  { %v85_v49 = vmul.f32 %v261_v43, %v79_v46 }
 0x10b   :  { %v62_v50 = vsub.f32 1.5, %v61_v48 }
 0x10c   :  { %v91_v51 = vadd.f32 %v262_v47, %v85_v49 }
 0x10d   :  { %v63_v52 = vmul.f32 %v270_v40, %v62_v50 }
 0x10e   :  { %249 = vmatmul.msk.f32.vlgmr.msra.gmra.mxu2 %vm28_vm0, %v91_v51  ;;  %251 = vmatmul.msk.f32.vlgmr.msra.gmra.mxu3 %vm28_vm0, %v91_v51 }
 0x10f   :  { %v67_v53 = vsel %vm66_vm7, %v270_v40, %v63_v52 }
 0x110   :  { %v78_v54 = vmul.f32 %v67_v53, %v329_v18 }
 0x112   :  { %v84_v55 = vmul.f32 %v261_v43, %v78_v54 }
 0x114   :  { %v90_v56 = vadd.f32 %v262_v47, %v84_v55 }
 0x116   :  { %248 = vmatmul.msk.f32.vlgmr.msra.gmra.mxu0 %vm28_vm0, %v90_v56  ;;  %250 = vmatmul.msk.f32.vlgmr.msra.gmra.mxu1 %vm28_vm0, %v90_v56  ;;  %v263_v56 = vld [vmem:[%s400_s3] ss:$0 sm:$0xff] }
 0x191   :  { %v157_v58 = vpop.f32.mrf.mxu3 }
 0x192   :  { %v372_v59 = vadd.f32 %v264_v57, %v157_v58 }
 0x193   :  { %v154_v60 = vpop.f32.mrf.mxu1 }
 0x194   :  { %v375_v61 = vmul.f32 0.70710677, %v372_v59  ;;  %v377_v62 = vadd.f32 %v264_v57, %v154_v60  ;;  %v130_v57 = vpop.f32.mrf.mxu2 }
 0x196   :  { %v165_v63 = vand.u32 2147483647, %v375_v61  ;;  %v381_v0 = vmul.f32 0.70710677, %v377_v62  ;;  %vm231_vm0 = vcmp.lt.f32.partialorder %v375_v61, 0.0 }
 0x198   :  { %v167_v1 = vmul.f32 0.3275911, %v165_v63  ;;  %v164_v2 = vand.u32 2147483647, %v381_v0  ;;  %v219_v22 = vsub.f32 0.0, %v165_v63  ;;  %vm230_vm1 = vcmp.lt.f32.partialorder %v381_v0, 0.0 }
 0x19a   :  { %v169_v3 = vadd.f32 1.0, %v167_v1  ;;  %v166_v4 = vmul.f32 0.3275911, %v164_v2  ;;  %v221_v28 = vmul.f32 %v219_v22, %v165_v63  ;;  %v218_v30 = vsub.f32 0.0, %v164_v2 }
 0x19b   :  { %v161_v63 = vmul.f32 0.5, %v372_v59 }
 0x19c   :  { %271 = vrcp.f32 %v169_v3  ;;  %v168_v5 = vadd.f32 1.0, %v166_v4  ;;  %v194_v10 = vand.u32 2147483647, %v169_v3  ;;  %v196_v11 = vand.u32 2147483648, %v169_v3 }
 0x19d   :  { %vm190_vm9 = vweird.f32 %v169_v3  ;;  %v224_v35 = vmul.f32 1.442695, %v221_v28  ;;  %v220_v36 = vmul.f32 %v218_v30, %v164_v2 }
 0x19e   :  { %273 = vrcp.f32 %v168_v5  ;;  %vm195_vm11 = vcmp.eq.f32.partialorder %v194_v10, 8.507059e+37  ;;  %v197_v16 = vor.u32 1.1754944e-38, %v196_v11  ;;  %v181_v17 = vand.u32 2147483648, %v168_v5 }
 0x19f   :  { %v179_v20 = vand.u32 2147483647, %v168_v5  ;;  %vm175_vm13 = vweird.f32 %v168_v5  ;;  %275 = vpow2.f32 %v224_v35  ;;  %v222_v41 = vmul.f32 1.442695, %v220_v36 }
 0x1a0   :  { %v182_v25 = vor.u32 1.1754944e-38, %v181_v17 }
 0x1a1   :  { %vm180_vm15 = vcmp.eq.f32.partialorder %v179_v20, 8.507059e+37  ;;  %277 = vpow2.f32 %v222_v41 }
 0x1a2   :  { %v272_v6 = vpop.eup %271 }
 0x1a3   :  { %v186_v7 = vmul.f32 %v272_v6, %v169_v3  ;;  %vm191_vm8 = vweird.f32 %v272_v6  ;;  %v131_v3 = vadd.f32 %v263_v56, %v130_v57 }
 0x1a4   :  { %v274_v9 = vpop.eup %273  ;;  %vm192_vm10 = vmor %vm190_vm9, %vm191_vm8 }
 0x1a5   :  { %v187_v8 = vsub.f32 1.0, %v186_v7  ;;  %v171_v13 = vmul.f32 %v274_v9, %v168_v5  ;;  %vm176_vm12 = vweird.f32 %v274_v9  ;;  %v276_v48 = vpop.eup %275  ;;  %v127_v5 = vpop.f32.mrf.mxu0 }
 0x1a6   :  { %vm177_vm14 = vmor %vm175_vm13, %vm176_vm12  ;;  %v128_v61 = vadd.f32 %v263_v56, %v127_v5 }
 0x1a7   :  { %v188_v12 = vmul.f32 %v272_v6, %v187_v8  ;;  %v172_v15 = vsub.f32 1.0, %v171_v13  ;;  %v278_v53 = vpop.eup %277  ;;  %v160_v8 = vmul.f32 0.5, %v377_v62 }
 0x1a9   :  { %v189_v14 = vadd.f32 %v272_v6, %v188_v12  ;;  %v173_v19 = vmul.f32 %v274_v9, %v172_v15 }
 0x1ab   :  { %v193_v18 = vsel %vm192_vm10, %v272_v6, %v189_v14  ;;  %v174_v24 = vadd.f32 %v274_v9, %v173_v19 }
 0x1ac   :  { %v198_v21 = vsel %vm195_vm11, %v197_v16, %v193_v18 }
 0x1ad   :  { %v201_v23 = vmul.f32 1.0614054, %v198_v21  ;;  %v178_v27 = vsel %vm177_vm14, %v274_v9, %v174_v24 }
 0x1ae   :  { %v183_v29 = vsel %vm180_vm15, %v182_v25, %v178_v27 }
 0x1af   :  { %v203_v26 = vadd.f32 -1.4531521, %v201_v23  ;;  %v200_v32 = vmul.f32 1.0614054, %v183_v29 }
 0x1b1   :  { %v205_v31 = vmul.f32 %v203_v26, %v198_v21  ;;  %v202_v34 = vadd.f32 -1.4531521, %v200_v32 }
 0x1b3   :  { %v207_v33 = vadd.f32 1.4214138, %v205_v31  ;;  %v204_v38 = vmul.f32 %v202_v34, %v183_v29 }
 0x1b5   :  { %v209_v37 = vmul.f32 %v207_v33, %v198_v21  ;;  %v206_v40 = vadd.f32 1.4214138, %v204_v38 }
 0x1b7   :  { %v211_v39 = vadd.f32 -0.28449672, %v209_v37  ;;  %v208_v43 = vmul.f32 %v206_v40, %v183_v29 }
 0x1b9   :  { %v213_v42 = vmul.f32 %v211_v39, %v198_v21  ;;  %v210_v45 = vadd.f32 -0.28449672, %v208_v43 }
 0x1bb   :  { %v215_v44 = vadd.f32 0.2548296, %v213_v42  ;;  %v212_v47 = vmul.f32 %v210_v45, %v183_v29 }
 0x1bd   :  { %v217_v46 = vmul.f32 %v215_v44, %v198_v21  ;;  %v214_v50 = vadd.f32 0.2548296, %v212_v47 }
 0x1bf   :  { %v227_v49 = vmul.f32 %v276_v48, %v217_v46  ;;  %v216_v52 = vmul.f32 %v214_v50, %v183_v29 }
 0x1c1   :  { %v229_v51 = vsub.f32 1.0, %v227_v49  ;;  %v226_v55 = vmul.f32 %v278_v53, %v216_v52 }
 0x1c3   :  { %v233_v54 = vsub.f32 0.0, %v229_v51  ;;  %v228_v60 = vsub.f32 1.0, %v226_v55 }
 0x1c5   :  { %v235_v58 = vsel %vm231_vm0, %v233_v54, %v229_v51  ;;  %v232_v2 = vsub.f32 0.0, %v228_v60 }
 0x1c6   :  { %v237_v1 = vadd.f32 1.0, %v235_v58 }
 0x1c7   :  { %v234_v6 = vsel %vm230_vm1, %v232_v2, %v228_v60 }
 0x1c8   :  { %v239_v4 = vmul.f32 %v237_v1, %v161_v63  ;;  %v236_v9 = vadd.f32 1.0, %v234_v6 }
 0x1ca   :  { %v241_v7 = vmul.f32 %v239_v4, %v131_v3  ;;  %v238_v10 = vmul.f32 %v236_v9, %v160_v8 }
 0x1cc   :  { %243 = vst [vmem:[%s404_s7 + $0x8] sm:$0xff] %v241_v7  ;;  %v240_v11 = vmul.f32 %v238_v10, %v128_v61 }
 0x1ce   :  { %242 = vst [vmem:[%s404_s7] sm:$0xff] %v240_v11 }

</bundles_post_ra>
